<compile_context>
chip_gen: v5e
topology: v5e:2x2
jax: 0.10.0
libtpu: 0.0.40
codegen_flags: <defaults>
</compile_context>

<pallas_src>
import functools

import jax
import jax.numpy as jnp
from jax.experimental import pallas as pl
from jax.experimental.pallas import tpu as pltpu


def _round_up(x, m):
    return ((x + m - 1) // m) * m


def _vmem_cap_bytes():
    """Generation-aware VMEM request ceiling."""
    phys = 128 * 1024 * 1024
    try:
        info = pltpu.get_tpu_info()
        phys = int(getattr(info, "vmem_capacity_bytes", phys))
    except Exception:
        pass
    if phys >= 128 * 1024 * 1024:
        # v5e / v6e: 128 MiB physical -> leave ample compiler headroom.
        return 100 * 1024 * 1024
    # v7x-class (64 MiB per TC): leave ~12 MiB for Mosaic scratch / pipeline.
    return max(phys - 12 * 1024 * 1024, 32 * 1024 * 1024)


# Flipped to False (once) if this JAX build rejects single-buffered BlockSpecs.
_USE_BUFFERED_1 = [True]


def _weight_specs(shapes, single_buffer):
    """Constant-index_map specs for weights; single-buffered when supported."""
    if single_buffer:
        try:
            mode = pl.Buffered(1)
            return [pl.BlockSpec(s, lambda i: (0, 0), pipeline_mode=mode)
                    for s in shapes]
        except Exception:
            pass
    return [pl.BlockSpec(s, lambda i: (0, 0)) for s in shapes]


def _policy_kernel(num_actions, log_std_min, log_std_max,
                   state_ref,
                   w1_ref, b1_ref, w2_ref, b2_ref,
                   w3_ref, b3_ref, w4_ref, b4_ref,
                   wh_ref, bh_ref,
                   out_ref):
    # Hot path: 5 MXU matmuls (heads fused) + bias adds + ReLU + masked clamp.
    x = state_ref[...]

    def linear(v, w_ref, b_ref):
        return jnp.dot(v, w_ref[...], preferred_element_type=jnp.float32) + b_ref[...]

    x = jnp.maximum(linear(x, w1_ref, b1_ref), 0.0)
    x = jnp.maximum(linear(x, w2_ref, b2_ref), 0.0)
    x = jnp.maximum(linear(x, w3_ref, b3_ref), 0.0)
    x = jnp.maximum(linear(x, w4_ref, b4_ref), 0.0)

    # Fused heads: columns [0, A) = mean, [A, 2A) = log_std, rest = zero pad.
    h = linear(x, wh_ref, bh_ref)
    col = jax.lax.broadcasted_iota(jnp.int32, h.shape, dimension=1)
    clamped = jnp.clip(h, log_std_min, log_std_max)
    out_ref[...] = jnp.where(col >= num_actions, clamped, h).astype(out_ref.dtype)


def prepare_params(params):
    """Pad + concatenate weights ONCE (hoisted out of the per-call hot path).

    Zero-padding is exact in f32: padded hidden units get bias 0 -> relu(0)=0,
    and padded weight rows contribute 0 downstream.
    """
    num_inputs = params["w1"].shape[0]
    H = params["w1"].shape[1]
    A = params["wm"].shape[1]
    H_pad = _round_up(H, 128)                 # lane-align hidden features
    P = _round_up(max(2 * A, 1), 128)         # lane-dense fused-head output slab

    def padw(w, rows, cols):
        w = jnp.asarray(w, jnp.float32)
        return jnp.pad(w, ((0, rows - w.shape[0]), (0, cols - w.shape[1])))

    weights = (
        padw(params["w1"], num_inputs, H_pad), padw(params["b1"], 1, H_pad),
        padw(params["w2"], H_pad, H_pad),      padw(params["b2"], 1, H_pad),
        padw(params["w3"], H_pad, H_pad),      padw(params["b3"], 1, H_pad),
        padw(params["w4"], H_pad, H_pad),      padw(params["b4"], 1, H_pad),
        padw(jnp.concatenate([params["wm"], params["ws"]], axis=1), H_pad, P),
        padw(jnp.concatenate([params["bm"], params["bs"]], axis=1), 1, P),
    )
    weights = jax.device_put(weights)   # materialized once, reused every call
    return {"weights": weights, "num_inputs": int(num_inputs),
            "H_pad": int(H_pad), "P": int(P), "A": int(A)}


def policy_forward(state, params, log_std_min=-20.0, log_std_max=2.0):
    """state: (B, num_inputs) f32. params: raw dict OR prepare_params() output."""
    if "weights" not in params:
        params = prepare_params(params)

    weights = params["weights"]
    num_inputs, H_pad, P, A = (params["num_inputs"], params["H_pad"],
                               params["P"], params["A"])

    state = jnp.asarray(state, jnp.float32)
    B = state.shape[0]
    assert state.shape[1] == num_inputs

    weight_bytes = 4 * sum(int(w.size) for w in weights)
    cap = _vmem_cap_bytes()

    # --- batch block sizing: derived from the VMEM budget, not a hard cap ---
    # per-row live bytes: double-buffered state + output blocks, ~3 live
    # (block_b, H_pad) activations of headroom for the MLP chain.
    B_min = _round_up(B, 8)
    per_row_bytes = 4 * (2 * num_inputs + 2 * P + 3 * H_pad)
    avail = cap - weight_bytes - (4 << 20)
    block_max = (avail // per_row_bytes) // 8 * 8 if avail > 0 else 8
    block_max = int(max(8, min(block_max, 2048)))
    if B_min >= 16:
        # >=2 grid steps so the "parallel" axis engages both v7x TensorCores;
        # keep each block as large as the batch/VMEM allows.
        target = _round_up((B_min + 1) // 2, 8)
    else:
        target = B_min
    block_b = max(8, min(block_max, target))
    B_pad = _round_up(B, block_b)
    grid = (B_pad // block_b,)

    state_p = jnp.pad(state, ((0, B_pad - B), (0, 0)))

    # Advisory cost estimate for XLA scheduling around this custom call.
    flops = 2 * B_pad * (num_inputs * H_pad + 3 * H_pad * H_pad + H_pad * P)
    cost = pl.CostEstimate(
        flops=flops, transcendentals=0,
        bytes_accessed=weight_bytes + 4 * (int(state_p.size) + B_pad * P))

    kernel = functools.partial(_policy_kernel, A,
                               float(log_std_min), float(log_std_max))

    def run(single_buffer):
        buf_factor = 1 if single_buffer else 2
        vmem_bytes = (buf_factor * weight_bytes
                      + 2 * 4 * block_b * (num_inputs + P)
                      + 3 * 4 * block_b * H_pad)
        vmem_limit = int(min(max(int(vmem_bytes * 1.3), 4 * 1024 * 1024), cap))
        w_specs = _weight_specs([w.shape for w in weights], single_buffer)
        return pl.pallas_call(
            kernel,
            out_shape=jax.ShapeDtypeStruct((B_pad, P), jnp.float32),
            grid=grid,
            in_specs=[pl.BlockSpec((block_b, num_inputs), lambda i: (i, 0))] + w_specs,
            out_specs=pl.BlockSpec((block_b, P), lambda i: (i, 0)),
            compiler_params=pltpu.CompilerParams(
                dimension_semantics=("parallel",),  # 2x on v7x, no-op elsewhere
                vmem_limit_bytes=vmem_limit),
            cost_estimate=cost,
        )(state_p, *weights)

    if _USE_BUFFERED_1[0]:
        try:
            out = run(True)
        except Exception:
            _USE_BUFFERED_1[0] = False     # this build dislikes Buffered(1)
            out = run(False)
    else:
        out = run(False)

    mean = out[:B, :A]
    log_std = out[:B, A:2 * A]
    return mean, log_std


def init_params(key, num_inputs, num_actions, hidden_size, init_w=0.003):
    """Deterministic init mirroring the PyTorch module's shapes."""
    keys = jax.random.split(key, 12)

    def layer(kw, kb, fan_in, fan_out, bound):
        w = jax.random.uniform(kw, (fan_in, fan_out), jnp.float32, -bound, bound)
        b = jax.random.uniform(kb, (1, fan_out), jnp.float32, -bound, bound)
        return w, b

    p = {}
    p["w1"], p["b1"] = layer(keys[0], keys[1], num_inputs, hidden_size,
                             1.0 / (num_inputs ** 0.5))
    p["w2"], p["b2"] = layer(keys[2], keys[3], hidden_size, hidden_size,
                             1.0 / (hidden_size ** 0.5))
    p["w3"], p["b3"] = layer(keys[4], keys[5], hidden_size, hidden_size,
                             1.0 / (hidden_size ** 0.5))
    p["w4"], p["b4"] = layer(keys[6], keys[7], hidden_size, hidden_size,
                             1.0 / (hidden_size ** 0.5))
    p["wm"], p["bm"] = layer(keys[8], keys[9], hidden_size, num_actions, init_w)
    p["ws"], p["bs"] = layer(keys[10], keys[11], hidden_size, num_actions, init_w)
    return p


def policy_forward_ref(state, params, log_std_min=-20.0, log_std_max=2.0):
    x = state
    for i in (1, 2, 3, 4):
        x = jnp.maximum(x @ params[f"w{i}"] + params[f"b{i}"], 0.0)
    mean = x @ params["wm"] + params["bm"]
    log_std = jnp.clip(x @ params["ws"] + params["bs"], log_std_min, log_std_max)
    return mean, log_std


# TODO(synk): evaluate()/get_action() (Normal sampling, tanh squash, log-prob)
# are not part of forward() and are left to the host-side JAX wrapper.

if __name__ == "__main__":
    key = jax.random.PRNGKey(0)
    batch, num_inputs, num_actions, hidden_size = 2, 16, 4, 32

    k_state, k_params, k_state2 = jax.random.split(key, 3)
    state = jax.random.normal(k_state, (batch, num_inputs), jnp.float32)
    params = init_params(k_params, num_inputs, num_actions, hidden_size)

    # Weight padding hoisted out of the per-call hot path.
    prepared = prepare_params(params)

    mean, log_std = policy_forward(state, prepared)
    jax.block_until_ready((mean, log_std))

    mean_ref, log_std_ref = policy_forward_ref(state, params)
    assert mean.shape == (batch, num_actions)
    assert log_std.shape == (batch, num_actions)
    assert jnp.allclose(mean, mean_ref, atol=1e-5), "mean mismatch"
    assert jnp.allclose(log_std, log_std_ref, atol=1e-5), "log_std mismatch"

    # Exercise the multi-block batch grid (>=2 "parallel" steps) + ragged pad.
    batch2 = 300
    state2 = jax.random.normal(k_state2, (batch2, num_inputs), jnp.float32)
    mean2, log_std2 = policy_forward(state2, prepared)
    jax.block_until_ready((mean2, log_std2))
    mean2_ref, log_std2_ref = policy_forward_ref(state2, params)
    assert mean2.shape == (batch2, num_actions)
    assert jnp.allclose(mean2, mean2_ref, atol=1e-5), "mean mismatch (B=300)"
    assert jnp.allclose(log_std2, log_std2_ref, atol=1e-5), "log_std mismatch (B=300)"

    print("KERNEL_OK")
</pallas_src>

<mosaic_0001>
module attributes {stable_mosaic.version = 11 : i64} {
  func.func @_policy_kernel(%arg0: i32, %arg1: memref<8x16xf32, #tpu.memory_space<vmem>>, %arg2: memref<16x128xf32, #tpu.memory_space<vmem>>, %arg3: memref<1x128xf32, #tpu.memory_space<vmem>>, %arg4: memref<128x128xf32, #tpu.memory_space<vmem>>, %arg5: memref<1x128xf32, #tpu.memory_space<vmem>>, %arg6: memref<128x128xf32, #tpu.memory_space<vmem>>, %arg7: memref<1x128xf32, #tpu.memory_space<vmem>>, %arg8: memref<128x128xf32, #tpu.memory_space<vmem>>, %arg9: memref<1x128xf32, #tpu.memory_space<vmem>>, %arg10: memref<128x128xf32, #tpu.memory_space<vmem>>, %arg11: memref<1x128xf32, #tpu.memory_space<vmem>>, %arg12: memref<8x128xf32, #tpu.memory_space<vmem>>) attributes {dimension_semantics = [#tpu.dimension_semantics<parallel>], iteration_bounds = array<i64: 1>, scalar_prefetch = 0 : i64, scratch_operands = 0 : i64, tpu.core_type = #tpu.core_type<tc>, window_params = [{transform_indices = @transform_0, window_bounds = array<i64: 8, 16>}, {pipeline_mode = #tpu.pipeline_mode<synchronous>, transform_indices = @transform_1, window_bounds = array<i64: 16, 128>}, {pipeline_mode = #tpu.pipeline_mode<synchronous>, transform_indices = @transform_2, window_bounds = array<i64: 1, 128>}, {pipeline_mode = #tpu.pipeline_mode<synchronous>, transform_indices = @transform_3, window_bounds = array<i64: 128, 128>}, {pipeline_mode = #tpu.pipeline_mode<synchronous>, transform_indices = @transform_4, window_bounds = array<i64: 1, 128>}, {pipeline_mode = #tpu.pipeline_mode<synchronous>, transform_indices = @transform_5, window_bounds = array<i64: 128, 128>}, {pipeline_mode = #tpu.pipeline_mode<synchronous>, transform_indices = @transform_6, window_bounds = array<i64: 1, 128>}, {pipeline_mode = #tpu.pipeline_mode<synchronous>, transform_indices = @transform_7, window_bounds = array<i64: 128, 128>}, {pipeline_mode = #tpu.pipeline_mode<synchronous>, transform_indices = @transform_8, window_bounds = array<i64: 1, 128>}, {pipeline_mode = #tpu.pipeline_mode<synchronous>, transform_indices = @transform_9, window_bounds = array<i64: 128, 128>}, {pipeline_mode = #tpu.pipeline_mode<synchronous>, transform_indices = @transform_10, window_bounds = array<i64: 1, 128>}, {transform_indices = @transform_11, window_bounds = array<i64: 8, 128>}]} {
    %c0 = arith.constant 0 : index
    %c0_0 = arith.constant 0 : index
    %0 = vector.load %arg1[%c0, %c0_0] : memref<8x16xf32, #tpu.memory_space<vmem>>, vector<8x16xf32>
    %c0_1 = arith.constant 0 : index
    %c0_2 = arith.constant 0 : index
    %1 = vector.load %arg2[%c0_1, %c0_2] : memref<16x128xf32, #tpu.memory_space<vmem>>, vector<16x128xf32>
    %cst = arith.constant dense<0.000000e+00> : vector<8x128xf32>
    %2 = tpu.matmul %0, %1, %cst {dimension_numbers = #tpu.dot_dimension_numbers<[1], [0], [0], [1], [0, 0, 1, 1], [], []>} : vector<8x16xf32>, vector<16x128xf32>, vector<8x128xf32> -> vector<8x128xf32>
    %c0_3 = arith.constant 0 : index
    %c0_4 = arith.constant 0 : index
    %3 = vector.load %arg3[%c0_3, %c0_4] : memref<1x128xf32, #tpu.memory_space<vmem>>, vector<1x128xf32>
    %4 = vector.broadcast %3 : vector<1x128xf32> to vector<8x128xf32>
    %5 = arith.addf %2, %4 : vector<8x128xf32>
    %cst_5 = arith.constant 0.000000e+00 : f32
    %6 = vector.broadcast %cst_5 : f32 to vector<8x128xf32>
    %7 = arith.maximumf %5, %6 : vector<8x128xf32>
    %c0_6 = arith.constant 0 : index
    %c0_7 = arith.constant 0 : index
    %8 = vector.load %arg4[%c0_6, %c0_7] : memref<128x128xf32, #tpu.memory_space<vmem>>, vector<128x128xf32>
    %cst_8 = arith.constant dense<0.000000e+00> : vector<8x128xf32>
    %9 = tpu.matmul %7, %8, %cst_8 {dimension_numbers = #tpu.dot_dimension_numbers<[1], [0], [0], [1], [0, 0, 1, 1], [], []>} : vector<8x128xf32>, vector<128x128xf32>, vector<8x128xf32> -> vector<8x128xf32>
    %c0_9 = arith.constant 0 : index
    %c0_10 = arith.constant 0 : index
    %10 = vector.load %arg5[%c0_9, %c0_10] : memref<1x128xf32, #tpu.memory_space<vmem>>, vector<1x128xf32>
    %11 = vector.broadcast %10 : vector<1x128xf32> to vector<8x128xf32>
    %12 = arith.addf %9, %11 : vector<8x128xf32>
    %cst_11 = arith.constant 0.000000e+00 : f32
    %13 = vector.broadcast %cst_11 : f32 to vector<8x128xf32>
    %14 = arith.maximumf %12, %13 : vector<8x128xf32>
    %c0_12 = arith.constant 0 : index
    %c0_13 = arith.constant 0 : index
    %15 = vector.load %arg6[%c0_12, %c0_13] : memref<128x128xf32, #tpu.memory_space<vmem>>, vector<128x128xf32>
    %cst_14 = arith.constant dense<0.000000e+00> : vector<8x128xf32>
    %16 = tpu.matmul %14, %15, %cst_14 {dimension_numbers = #tpu.dot_dimension_numbers<[1], [0], [0], [1], [0, 0, 1, 1], [], []>} : vector<8x128xf32>, vector<128x128xf32>, vector<8x128xf32> -> vector<8x128xf32>
    %c0_15 = arith.constant 0 : index
    %c0_16 = arith.constant 0 : index
    %17 = vector.load %arg7[%c0_15, %c0_16] : memref<1x128xf32, #tpu.memory_space<vmem>>, vector<1x128xf32>
    %18 = vector.broadcast %17 : vector<1x128xf32> to vector<8x128xf32>
    %19 = arith.addf %16, %18 : vector<8x128xf32>
    %cst_17 = arith.constant 0.000000e+00 : f32
    %20 = vector.broadcast %cst_17 : f32 to vector<8x128xf32>
    %21 = arith.maximumf %19, %20 : vector<8x128xf32>
    %c0_18 = arith.constant 0 : index
    %c0_19 = arith.constant 0 : index
    %22 = vector.load %arg8[%c0_18, %c0_19] : memref<128x128xf32, #tpu.memory_space<vmem>>, vector<128x128xf32>
    %cst_20 = arith.constant dense<0.000000e+00> : vector<8x128xf32>
    %23 = tpu.matmul %21, %22, %cst_20 {dimension_numbers = #tpu.dot_dimension_numbers<[1], [0], [0], [1], [0, 0, 1, 1], [], []>} : vector<8x128xf32>, vector<128x128xf32>, vector<8x128xf32> -> vector<8x128xf32>
    %c0_21 = arith.constant 0 : index
    %c0_22 = arith.constant 0 : index
    %24 = vector.load %arg9[%c0_21, %c0_22] : memref<1x128xf32, #tpu.memory_space<vmem>>, vector<1x128xf32>
    %25 = vector.broadcast %24 : vector<1x128xf32> to vector<8x128xf32>
    %26 = arith.addf %23, %25 : vector<8x128xf32>
    %cst_23 = arith.constant 0.000000e+00 : f32
    %27 = vector.broadcast %cst_23 : f32 to vector<8x128xf32>
    %28 = arith.maximumf %26, %27 : vector<8x128xf32>
    %c0_24 = arith.constant 0 : index
    %c0_25 = arith.constant 0 : index
    %29 = vector.load %arg10[%c0_24, %c0_25] : memref<128x128xf32, #tpu.memory_space<vmem>>, vector<128x128xf32>
    %cst_26 = arith.constant dense<0.000000e+00> : vector<8x128xf32>
    %30 = tpu.matmul %28, %29, %cst_26 {dimension_numbers = #tpu.dot_dimension_numbers<[1], [0], [0], [1], [0, 0, 1, 1], [], []>} : vector<8x128xf32>, vector<128x128xf32>, vector<8x128xf32> -> vector<8x128xf32>
    %c0_27 = arith.constant 0 : index
    %c0_28 = arith.constant 0 : index
    %31 = vector.load %arg11[%c0_27, %c0_28] : memref<1x128xf32, #tpu.memory_space<vmem>>, vector<1x128xf32>
    %32 = vector.broadcast %31 : vector<1x128xf32> to vector<8x128xf32>
    %33 = arith.addf %30, %32 : vector<8x128xf32>
    %34 = tpu.iota {dimensions = array<i32: 1>} : vector<8x128xi32>
    %cst_29 = arith.constant -2.000000e+01 : f32
    %cst_30 = arith.constant 2.000000e+00 : f32
    %35 = vector.broadcast %cst_29 : f32 to vector<8x128xf32>
    %36 = arith.maximumf %35, %33 : vector<8x128xf32>
    %37 = vector.broadcast %cst_30 : f32 to vector<8x128xf32>
    %38 = arith.minimumf %37, %36 : vector<8x128xf32>
    %c4_i32 = arith.constant 4 : i32
    %39 = vector.broadcast %c4_i32 : i32 to vector<8x128xi32>
    %40 = arith.cmpi sge, %34, %39 : vector<8x128xi32>
    %41 = arith.select %40, %38, %33 : vector<8x128xi1>, vector<8x128xf32>
    %c0_31 = arith.constant 0 : index
    %c0_32 = arith.constant 0 : index
    %42 = vector.load %arg12[%c0_31, %c0_32] : memref<8x128xf32, #tpu.memory_space<vmem>>, vector<8x128xf32>
    tpu.vector_store %arg12[%c0_31, %c0_32], %41 {strides = array<i32>} : memref<8x128xf32, #tpu.memory_space<vmem>>, vector<8x128xf32>,
    return
  }
  func.func @transform_0(%arg0: i32) -> (i32, i32) {
    %c0_i32 = arith.constant 0 : i32
    %c0_i32_0 = arith.constant 0 : i32
    return %arg0, %c0_i32 : i32, i32
  }
  func.func @transform_1(%arg0: i32) -> (i32, i32) {
    %c0_i32 = arith.constant 0 : i32
    %c0_i32_0 = arith.constant 0 : i32
    %c0_i32_1 = arith.constant 0 : i32
    return %c0_i32, %c0_i32_0 : i32, i32
  }
  func.func @transform_2(%arg0: i32) -> (i32, i32) {
    %c0_i32 = arith.constant 0 : i32
    %c0_i32_0 = arith.constant 0 : i32
    %c0_i32_1 = arith.constant 0 : i32
    return %c0_i32, %c0_i32_0 : i32, i32
  }
  func.func @transform_3(%arg0: i32) -> (i32, i32) {
    %c0_i32 = arith.constant 0 : i32
    %c0_i32_0 = arith.constant 0 : i32
    %c0_i32_1 = arith.constant 0 : i32
    return %c0_i32, %c0_i32_0 : i32, i32
  }
  func.func @transform_4(%arg0: i32) -> (i32, i32) {
    %c0_i32 = arith.constant 0 : i32
    %c0_i32_0 = arith.constant 0 : i32
    %c0_i32_1 = arith.constant 0 : i32
    return %c0_i32, %c0_i32_0 : i32, i32
  }
  func.func @transform_5(%arg0: i32) -> (i32, i32) {
    %c0_i32 = arith.constant 0 : i32
    %c0_i32_0 = arith.constant 0 : i32
    %c0_i32_1 = arith.constant 0 : i32
    return %c0_i32, %c0_i32_0 : i32, i32
  }
  func.func @transform_6(%arg0: i32) -> (i32, i32) {
    %c0_i32 = arith.constant 0 : i32
    %c0_i32_0 = arith.constant 0 : i32
    %c0_i32_1 = arith.constant 0 : i32
    return %c0_i32, %c0_i32_0 : i32, i32
  }
  func.func @transform_7(%arg0: i32) -> (i32, i32) {
    %c0_i32 = arith.constant 0 : i32
    %c0_i32_0 = arith.constant 0 : i32
    %c0_i32_1 = arith.constant 0 : i32
    return %c0_i32, %c0_i32_0 : i32, i32
  }
  func.func @transform_8(%arg0: i32) -> (i32, i32) {
    %c0_i32 = arith.constant 0 : i32
    %c0_i32_0 = arith.constant 0 : i32
    %c0_i32_1 = arith.constant 0 : i32
    return %c0_i32, %c0_i32_0 : i32, i32
  }
  func.func @transform_9(%arg0: i32) -> (i32, i32) {
    %c0_i32 = arith.constant 0 : i32
    %c0_i32_0 = arith.constant 0 : i32
    %c0_i32_1 = arith.constant 0 : i32
    return %c0_i32, %c0_i32_0 : i32, i32
  }
  func.func @transform_10(%arg0: i32) -> (i32, i32) {
    %c0_i32 = arith.constant 0 : i32
    %c0_i32_0 = arith.constant 0 : i32
    %c0_i32_1 = arith.constant 0 : i32
    return %c0_i32, %c0_i32_0 : i32, i32
  }
  func.func @transform_11(%arg0: i32) -> (i32, i32) {
    %c0_i32 = arith.constant 0 : i32
    %c0_i32_0 = arith.constant 0 : i32
    return %arg0, %c0_i32 : i32, i32
  }
}

module attributes {stable_mosaic.version = 11 : i64} {
  func.func @_policy_kernel(%arg0: i32, %arg1: memref<8x16xf32, #tpu.memory_space<vmem>>, %arg2: memref<16x128xf32, #tpu.memory_space<vmem>>, %arg3: memref<1x128xf32, #tpu.memory_space<vmem>>, %arg4: memref<128x128xf32, #tpu.memory_space<vmem>>, %arg5: memref<1x128xf32, #tpu.memory_space<vmem>>, %arg6: memref<128x128xf32, #tpu.memory_space<vmem>>, %arg7: memref<1x128xf32, #tpu.memory_space<vmem>>, %arg8: memref<128x128xf32, #tpu.memory_space<vmem>>, %arg9: memref<1x128xf32, #tpu.memory_space<vmem>>, %arg10: memref<128x128xf32, #tpu.memory_space<vmem>>, %arg11: memref<1x128xf32, #tpu.memory_space<vmem>>, %arg12: memref<8x128xf32, #tpu.memory_space<vmem>>) attributes {dimension_semantics = [#tpu.dimension_semantics<parallel>], iteration_bounds = array<i64: 1>, scalar_prefetch = 0 : i64, scratch_operands = 0 : i64, tpu.core_type = #tpu.core_type<tc>, window_params = [{transform_indices = @transform_0, window_bounds = array<i64: 8, 16>}, {pipeline_mode = #tpu.pipeline_mode<synchronous>, transform_indices = @transform_1, window_bounds = array<i64: 16, 128>}, {pipeline_mode = #tpu.pipeline_mode<synchronous>, transform_indices = @transform_2, window_bounds = array<i64: 1, 128>}, {pipeline_mode = #tpu.pipeline_mode<synchronous>, transform_indices = @transform_3, window_bounds = array<i64: 128, 128>}, {pipeline_mode = #tpu.pipeline_mode<synchronous>, transform_indices = @transform_4, window_bounds = array<i64: 1, 128>}, {pipeline_mode = #tpu.pipeline_mode<synchronous>, transform_indices = @transform_5, window_bounds = array<i64: 128, 128>}, {pipeline_mode = #tpu.pipeline_mode<synchronous>, transform_indices = @transform_6, window_bounds = array<i64: 1, 128>}, {pipeline_mode = #tpu.pipeline_mode<synchronous>, transform_indices = @transform_7, window_bounds = array<i64: 128, 128>}, {pipeline_mode = #tpu.pipeline_mode<synchronous>, transform_indices = @transform_8, window_bounds = array<i64: 1, 128>}, {pipeline_mode = #tpu.pipeline_mode<synchronous>, transform_indices = @transform_9, window_bounds = array<i64: 128, 128>}, {pipeline_mode = #tpu.pipeline_mode<synchronous>, transform_indices = @transform_10, window_bounds = array<i64: 1, 128>}, {transform_indices = @transform_11, window_bounds = array<i64: 8, 128>}]} {
    %c0 = arith.constant 0 : index
    %c0_0 = arith.constant 0 : index
    %0 = vector.load %arg1[%c0, %c0_0] : memref<8x16xf32, #tpu.memory_space<vmem>>, vector<8x16xf32>
    %c0_1 = arith.constant 0 : index
    %c0_2 = arith.constant 0 : index
    %1 = vector.load %arg2[%c0_1, %c0_2] : memref<16x128xf32, #tpu.memory_space<vmem>>, vector<16x128xf32>
    %cst = arith.constant dense<0.000000e+00> : vector<8x128xf32>
    %2 = tpu.matmul %0, %1, %cst {dimension_numbers = #tpu.dot_dimension_numbers<[1], [0], [0], [1], [0, 0, 1, 1], [], []>} : vector<8x16xf32>, vector<16x128xf32>, vector<8x128xf32> -> vector<8x128xf32>
    %c0_3 = arith.constant 0 : index
    %c0_4 = arith.constant 0 : index
    %3 = vector.load %arg3[%c0_3, %c0_4] : memref<1x128xf32, #tpu.memory_space<vmem>>, vector<1x128xf32>
    %4 = vector.broadcast %3 : vector<1x128xf32> to vector<8x128xf32>
    %5 = arith.addf %2, %4 : vector<8x128xf32>
    %cst_5 = arith.constant 0.000000e+00 : f32
    %6 = vector.broadcast %cst_5 : f32 to vector<8x128xf32>
    %7 = arith.maximumf %5, %6 : vector<8x128xf32>
    %c0_6 = arith.constant 0 : index
    %c0_7 = arith.constant 0 : index
    %8 = vector.load %arg4[%c0_6, %c0_7] : memref<128x128xf32, #tpu.memory_space<vmem>>, vector<128x128xf32>
    %cst_8 = arith.constant dense<0.000000e+00> : vector<8x128xf32>
    %9 = tpu.matmul %7, %8, %cst_8 {dimension_numbers = #tpu.dot_dimension_numbers<[1], [0], [0], [1], [0, 0, 1, 1], [], []>} : vector<8x128xf32>, vector<128x128xf32>, vector<8x128xf32> -> vector<8x128xf32>
    %c0_9 = arith.constant 0 : index
    %c0_10 = arith.constant 0 : index
    %10 = vector.load %arg5[%c0_9, %c0_10] : memref<1x128xf32, #tpu.memory_space<vmem>>, vector<1x128xf32>
    %11 = vector.broadcast %10 : vector<1x128xf32> to vector<8x128xf32>
    %12 = arith.addf %9, %11 : vector<8x128xf32>
    %cst_11 = arith.constant 0.000000e+00 : f32
    %13 = vector.broadcast %cst_11 : f32 to vector<8x128xf32>
    %14 = arith.maximumf %12, %13 : vector<8x128xf32>
    %c0_12 = arith.constant 0 : index
    %c0_13 = arith.constant 0 : index
    %15 = vector.load %arg6[%c0_12, %c0_13] : memref<128x128xf32, #tpu.memory_space<vmem>>, vector<128x128xf32>
    %cst_14 = arith.constant dense<0.000000e+00> : vector<8x128xf32>
    %16 = tpu.matmul %14, %15, %cst_14 {dimension_numbers = #tpu.dot_dimension_numbers<[1], [0], [0], [1], [0, 0, 1, 1], [], []>} : vector<8x128xf32>, vector<128x128xf32>, vector<8x128xf32> -> vector<8x128xf32>
    %c0_15 = arith.constant 0 : index
    %c0_16 = arith.constant 0 : index
    %17 = vector.load %arg7[%c0_15, %c0_16] : memref<1x128xf32, #tpu.memory_space<vmem>>, vector<1x128xf32>
    %18 = vector.broadcast %17 : vector<1x128xf32> to vector<8x128xf32>
    %19 = arith.addf %16, %18 : vector<8x128xf32>
    %cst_17 = arith.constant 0.000000e+00 : f32
    %20 = vector.broadcast %cst_17 : f32 to vector<8x128xf32>
    %21 = arith.maximumf %19, %20 : vector<8x128xf32>
    %c0_18 = arith.constant 0 : index
    %c0_19 = arith.constant 0 : index
    %22 = vector.load %arg8[%c0_18, %c0_19] : memref<128x128xf32, #tpu.memory_space<vmem>>, vector<128x128xf32>
    %cst_20 = arith.constant dense<0.000000e+00> : vector<8x128xf32>
    %23 = tpu.matmul %21, %22, %cst_20 {dimension_numbers = #tpu.dot_dimension_numbers<[1], [0], [0], [1], [0, 0, 1, 1], [], []>} : vector<8x128xf32>, vector<128x128xf32>, vector<8x128xf32> -> vector<8x128xf32>
    %c0_21 = arith.constant 0 : index
    %c0_22 = arith.constant 0 : index
    %24 = vector.load %arg9[%c0_21, %c0_22] : memref<1x128xf32, #tpu.memory_space<vmem>>, vector<1x128xf32>
    %25 = vector.broadcast %24 : vector<1x128xf32> to vector<8x128xf32>
    %26 = arith.addf %23, %25 : vector<8x128xf32>
    %cst_23 = arith.constant 0.000000e+00 : f32
    %27 = vector.broadcast %cst_23 : f32 to vector<8x128xf32>
    %28 = arith.maximumf %26, %27 : vector<8x128xf32>
    %c0_24 = arith.constant 0 : index
    %c0_25 = arith.constant 0 : index
    %29 = vector.load %arg10[%c0_24, %c0_25] : memref<128x128xf32, #tpu.memory_space<vmem>>, vector<128x128xf32>
    %cst_26 = arith.constant dense<0.000000e+00> : vector<8x128xf32>
    %30 = tpu.matmul %28, %29, %cst_26 {dimension_numbers = #tpu.dot_dimension_numbers<[1], [0], [0], [1], [0, 0, 1, 1], [], []>} : vector<8x128xf32>, vector<128x128xf32>, vector<8x128xf32> -> vector<8x128xf32>
    %c0_27 = arith.constant 0 : index
    %c0_28 = arith.constant 0 : index
    %31 = vector.load %arg11[%c0_27, %c0_28] : memref<1x128xf32, #tpu.memory_space<vmem>>, vector<1x128xf32>
    %32 = vector.broadcast %31 : vector<1x128xf32> to vector<8x128xf32>
    %33 = arith.addf %30, %32 : vector<8x128xf32>
    %34 = tpu.iota {dimensions = array<i32: 1>} : vector<8x128xi32>
    %cst_29 = arith.constant -2.000000e+01 : f32
    %cst_30 = arith.constant 2.000000e+00 : f32
    %35 = vector.broadcast %cst_29 : f32 to vector<8x128xf32>
    %36 = arith.maximumf %35, %33 : vector<8x128xf32>
    %37 = vector.broadcast %cst_30 : f32 to vector<8x128xf32>
    %38 = arith.minimumf %37, %36 : vector<8x128xf32>
    %c4_i32 = arith.constant 4 : i32
    %39 = vector.broadcast %c4_i32 : i32 to vector<8x128xi32>
    %40 = arith.cmpi sge, %34, %39 : vector<8x128xi32>
    %41 = arith.select %40, %38, %33 : vector<8x128xi1>, vector<8x128xf32>
    %c0_31 = arith.constant 0 : index
    %c0_32 = arith.constant 0 : index
    %42 = vector.load %arg12[%c0_31, %c0_32] : memref<8x128xf32, #tpu.memory_space<vmem>>, vector<8x128xf32>
    tpu.vector_store %arg12[%c0_31, %c0_32], %41 {strides = array<i32>} : memref<8x128xf32, #tpu.memory_space<vmem>>, vector<8x128xf32>,
    return
  }
  func.func @transform_0(%arg0: i32) -> (i32, i32) {
    %c0_i32 = arith.constant 0 : i32
    %c0_i32_0 = arith.constant 0 : i32
    return %arg0, %c0_i32 : i32, i32
  }
  func.func @transform_1(%arg0: i32) -> (i32, i32) {
    %c0_i32 = arith.constant 0 : i32
    %c0_i32_0 = arith.constant 0 : i32
    %c0_i32_1 = arith.constant 0 : i32
    return %c0_i32, %c0_i32_0 : i32, i32
  }
  func.func @transform_2(%arg0: i32) -> (i32, i32) {
    %c0_i32 = arith.constant 0 : i32
    %c0_i32_0 = arith.constant 0 : i32
    %c0_i32_1 = arith.constant 0 : i32
    return %c0_i32, %c0_i32_0 : i32, i32
  }
  func.func @transform_3(%arg0: i32) -> (i32, i32) {
    %c0_i32 = arith.constant 0 : i32
    %c0_i32_0 = arith.constant 0 : i32
    %c0_i32_1 = arith.constant 0 : i32
    return %c0_i32, %c0_i32_0 : i32, i32
  }
  func.func @transform_4(%arg0: i32) -> (i32, i32) {
    %c0_i32 = arith.constant 0 : i32
    %c0_i32_0 = arith.constant 0 : i32
    %c0_i32_1 = arith.constant 0 : i32
    return %c0_i32, %c0_i32_0 : i32, i32
  }
  func.func @transform_5(%arg0: i32) -> (i32, i32) {
    %c0_i32 = arith.constant 0 : i32
    %c0_i32_0 = arith.constant 0 : i32
    %c0_i32_1 = arith.constant 0 : i32
    return %c0_i32, %c0_i32_0 : i32, i32
  }
  func.func @transform_6(%arg0: i32) -> (i32, i32) {
    %c0_i32 = arith.constant 0 : i32
    %c0_i32_0 = arith.constant 0 : i32
    %c0_i32_1 = arith.constant 0 : i32
    return %c0_i32, %c0_i32_0 : i32, i32
  }
  func.func @transform_7(%arg0: i32) -> (i32, i32) {
    %c0_i32 = arith.constant 0 : i32
    %c0_i32_0 = arith.constant 0 : i32
    %c0_i32_1 = arith.constant 0 : i32
    return %c0_i32, %c0_i32_0 : i32, i32
  }
  func.func @transform_8(%arg0: i32) -> (i32, i32) {
    %c0_i32 = arith.constant 0 : i32
    %c0_i32_0 = arith.constant 0 : i32
    %c0_i32_1 = arith.constant 0 : i32
    return %c0_i32, %c0_i32_0 : i32, i32
  }
  func.func @transform_9(%arg0: i32) -> (i32, i32) {
    %c0_i32 = arith.constant 0 : i32
    %c0_i32_0 = arith.constant 0 : i32
    %c0_i32_1 = arith.constant 0 : i32
    return %c0_i32, %c0_i32_0 : i32, i32
  }
  func.func @transform_10(%arg0: i32) -> (i32, i32) {
    %c0_i32 = arith.constant 0 : i32
    %c0_i32_0 = arith.constant 0 : i32
    %c0_i32_1 = arith.constant 0 : i32
    return %c0_i32, %c0_i32_0 : i32, i32
  }
  func.func @transform_11(%arg0: i32) -> (i32, i32) {
    %c0_i32 = arith.constant 0 : i32
    %c0_i32_0 = arith.constant 0 : i32
    return %arg0, %c0_i32 : i32, i32
  }
}

</mosaic_0001>

<bundles_post_ra>
// kernel: tpu_custom_call.1
= control target key start
LH: loop header
LB: loop body
LE: loop exit
PB: predicated region body
PF: predicated region fallthrough
CT: control target
= control target key end

     0   :  { %16 = vsyncpa [#allocation3], 0  ;;  %s666_s0 = inlined_call_operand.hbm [shape: f32[8,16], index: 0, kind: input, shape index: {}]   ;;  %s667_s1 = inlined_call_operand.hbm [shape: f32[16,128], index: 1, kind: input, shape index: {}]   ;;  %s668_s2 = inlined_call_operand.vmem [shape: f32[1,128], index: 2, kind: input, shape index: {}]   ;;  %s669_s3 = inlined_call_operand.hbm [shape: f32[128,128], index: 3, kind: input, shape index: {}]   ;;  %s670_s4 = inlined_call_operand.vmem [shape: f32[1,128], index: 4, kind: input, shape index: {}]   ;;  %s671_s5 = inlined_call_operand.hbm [shape: f32[128,128], index: 5, kind: input, shape index: {}]   ;;  %s672_s6 = inlined_call_operand.vmem [shape: f32[1,128], index: 6, kind: input, shape index: {}]   ;;  %s673_s7 = inlined_call_operand.hbm [shape: f32[128,128], index: 7, kind: input, shape index: {}]   ;;  %s674_s8 = inlined_call_operand.vmem [shape: f32[1,128], index: 8, kind: input, shape index: {}]   ;;  %s675_s9 = inlined_call_operand.hbm [shape: f32[128,128], index: 9, kind: input, shape index: {}]   ;;  %s676_s10 = inlined_call_operand.vmem [shape: f32[1,128], index: 10, kind: input, shape index: {}]   ;;  %s677_s11 = inlined_call_operand.hbm [shape: f32[8,128], index: 11, kind: output, shape index: {}]  }
   0x1   :  { %17 = vsyncpa [#allocation6], 0 }
   0x2   :  { %18 = vsyncpa [#allocation9], 0 }
   0x3   :  { %19 = vsyncpa [#allocation12], 0  ;;  %s36_s19 = sshll.u32 %s667_s1, 4  ;;  %s37_s19 = int_to_ptr.hbm [resolvable:$true] %s36_s19 }
   0x4   :  { %20 = vsyncpa [#allocation4], 0  ;;  %s546_s20 = smov [#allocation5]   ;;  %s66_s24 = sshll.u32 %s671_s5, 4  ;;  %s67_s24 = int_to_ptr.hbm [resolvable:$true] %s66_s24 }
   0x5   :  { %s38_s21 = sshll.u32 %s546_s20, 4  ;;  %s547_s25 = smov 128   ;;  %s39_s21 = int_to_ptr.vmem [resolvable:$true] %s38_s21 }
   0x6   :  { %s548_s26 = smov 8   ;;  %s549_s27 = smov [#allocation8]  }
   0x7   :  { %44 = dma.hbm_to_vmem [thread:$0]  %s37_s19, 256, %s39_s21, [#allocation6], %s547_s25, %s547_s25, %s548_s26  }
   0x8   :  { %s68_s28 = sshll.u32 %s549_s27, 4  ;;  %s26_s30 = sshll.u32 %s666_s0, 4  ;;  %s69_s28 = int_to_ptr.vmem [resolvable:$true] %s68_s28  ;;  %s27_s30 = int_to_ptr.hbm [resolvable:$true] %s26_s30 }
   0x9   :  { %74 = dma.hbm_to_vmem [thread:$0]  %s67_s24, 2048, %s69_s28, [#allocation9], %s547_s25, %s547_s25, %s548_s26  }
   0xa   :  { %s51_s13 = sshll.u32 %s669_s3, 4  ;;  %s550_s14 = smov [#allocation2]   ;;  %s52_s13 = int_to_ptr.hbm [resolvable:$true] %s51_s13 }
   0xb   :  { %s28_s15 = sshll.u32 %s550_s14, 4  ;;  %s551_s16 = smov [#allocation7]   ;;  %s29_s15 = int_to_ptr.vmem [resolvable:$true] %s28_s15 }
   0xc   :  { %31 = dma.hbm_to_vmem [thread:$0]  %s27_s30, 128, %s29_s15, [#allocation3]  }
   0xd   :  { %s53_s17 = sshll.u32 %s551_s16, 4  ;;  %s81_s0 = sshll.u32 %s673_s7, 4  ;;  %s54_s17 = int_to_ptr.vmem [resolvable:$true] %s53_s17  ;;  %s82_s0 = int_to_ptr.hbm [resolvable:$true] %s81_s0 }
   0xe   :  { %59 = dma.hbm_to_vmem [thread:$0]  %s52_s13, 2048, %s54_s17, [#allocation6], %s547_s25, %s547_s25, %s548_s26  }
   0xf   :  { %s96_s3 = sshll.u32 %s675_s9, 4  ;;  %s552_s22 = smov [#allocation10]   ;;  %s97_s3 = int_to_ptr.hbm [resolvable:$true] %s96_s3 }
  0x10   :  { %s83_s23 = sshll.u32 %s552_s22, 4  ;;  %s553_s24 = smov [#allocation11]   ;;  %s84_s23 = int_to_ptr.vmem [resolvable:$true] %s83_s23 }
  0x11   :  { %89 = dma.hbm_to_vmem [thread:$0]  %s82_s0, 2048, %s84_s23, [#allocation9], %s547_s25, %s547_s25, %s548_s26  }
  0x12   :  { %s98_s7 = sshll.u32 %s553_s24, 4  ;;  %s99_s7 = int_to_ptr.vmem [resolvable:$true] %s98_s7 }
  0x13   :  { %104 = dma.hbm_to_vmem [thread:$0]  %s97_s3, 2048, %s99_s7, [#allocation12], %s547_s25, %s547_s25, %s548_s26  }
  0x14   :  { %536 = dma.done.wait [#allocation3], 128  }
  0x15   :  { %537 = vsyncadd [#allocation3], 4294967168 }
  0x16   :  { %538 = dma.done.wait [#allocation6], 2304  }
  0x17   :  { %539 = vsyncadd [#allocation6], 4294964992 }
  0x18   :  { %540 = dma.done.wait [#allocation9], 4096  }
  0x19   :  { %541 = vsyncadd [#allocation9], 4294963200 }
  0x1a   :  { %542 = dma.done.wait [#allocation12], 2048  }
  0x1b   :  { %543 = vsyncadd [#allocation12], 4294965248  ;;  %v133_v0 = vld [vmem:[#allocation5 + $0x8] sm:$0xff]  ;;  %v132_v1 = vld [vmem:[#allocation5] sm:$0xff]  ;;  %vm138_vm0 = vcmask 130048   ;;  %s554_s30 = smov [#allocation13]  }
  0x1c   :  { %156 = vmatpush.msra.mxu0 %v133_v0  ;;  %v131_v2 = vld [vmem:[#allocation2] sm:$0xff]  ;;  %v178_v3 = vld [vmem:[#allocation7 + $0x78] sm:$0xff]  ;;  %v177_v4 = vld [vmem:[#allocation7 + $0x70] sm:$0xff]  ;;  %s338_s5 = sshll.u32 %s554_s30, 4  ;;  %s340_s14 = sshll.u32 %s677_s11, 4  ;;  %s339_s5 = int_to_ptr.vmem [resolvable:$true] %s338_s5  ;;  %s341_s14 = int_to_ptr.hbm [resolvable:$true] %s340_s14 }
  0x1d   :  { %183 = vmatpush.msra.mxu1 %v178_v3  ;;  %v176_v5 = vld [vmem:[#allocation7 + $0x68] sm:$0xff]  ;;  %v175_v6 = vld [vmem:[#allocation7 + $0x60] sm:$0xff]  ;;  %v174_v7 = vld [vmem:[#allocation7 + $0x58] sm:$0xff] }
  0x1e   :  { %157 = vmatpush.msra.mxu0 %v132_v1  ;;  %v173_v8 = vld [vmem:[#allocation7 + $0x50] sm:$0xff]  ;;  %v172_v9 = vld [vmem:[#allocation7 + $0x48] sm:$0xff]  ;;  %v171_v10 = vld [vmem:[#allocation7 + $0x40] sm:$0xff] }
  0x1f   :  { %353 = vmatmul.msk.f32.vlgmr.msra.gmra.mxu0 %vm138_vm0, %v131_v2  ;;  %184 = vmatpush.msra.mxu1 %v177_v4  ;;  %v170_v11 = vld [vmem:[#allocation7 + $0x38] sm:$0xff]  ;;  %v169_v12 = vld [vmem:[#allocation7 + $0x30] sm:$0xff]  ;;  %v168_v13 = vld [vmem:[#allocation7 + $0x28] sm:$0xff] }
  0x20   :  { %v167_v14 = vld [vmem:[#allocation7 + $0x20] sm:$0xff]  ;;  %v166_v15 = vld [vmem:[#allocation7 + $0x18] sm:$0xff]  ;;  %v165_v16 = vld [vmem:[#allocation7 + $0x10] sm:$0xff] }
  0x21   :  { %185 = vmatpush.msra.mxu1 %v176_v5  ;;  %v164_v17 = vld [vmem:[#allocation7 + $0x8] sm:$0xff]  ;;  %v163_v18 = vld [vmem:[#allocation7] sm:$0xff]  ;;  %v219_v19 = vld [vmem:[#allocation8 + $0x78] sm:$0xff] }
  0x22   :  { %v218_v20 = vld [vmem:[#allocation8 + $0x70] sm:$0xff]  ;;  %224 = vmatpush.msra.mxu2 %v219_v19  ;;  %v217_v21 = vld [vmem:[#allocation8 + $0x68] sm:$0xff]  ;;  %v216_v22 = vld [vmem:[#allocation8 + $0x60] sm:$0xff]  ;;  %v326_v19 = vlaneseq }
  0x23   :  { %186 = vmatpush.msra.mxu1 %v175_v6  ;;  %v215_v23 = vld [vmem:[#allocation8 + $0x58] sm:$0xff]  ;;  %v214_v24 = vld [vmem:[#allocation8 + $0x50] sm:$0xff]  ;;  %v213_v25 = vld [vmem:[#allocation8 + $0x48] sm:$0xff] }
  0x24   :  { %225 = vmatpush.msra.mxu2 %v218_v20  ;;  %v212_v26 = vld [vmem:[#allocation8 + $0x40] sm:$0xff]  ;;  %v211_v27 = vld [vmem:[#allocation8 + $0x38] sm:$0xff]  ;;  %v210_v28 = vld [vmem:[#allocation8 + $0x30] sm:$0xff] }
  0x25   :  { %187 = vmatpush.msra.mxu1 %v174_v7  ;;  %v209_v29 = vld [vmem:[#allocation8 + $0x28] sm:$0xff]  ;;  %v208_v30 = vld [vmem:[#allocation8 + $0x20] sm:$0xff]  ;;  %v207_v31 = vld [vmem:[#allocation8 + $0x18] sm:$0xff] }
  0x26   :  { %226 = vmatpush.msra.mxu2 %v217_v21  ;;  %v363_v32 = vld [vmem:[%s668_s2] ss:$0 sm:$0xff]  ;;  %v206_v36 = vld [vmem:[#allocation8 + $0x10] sm:$0xff]  ;;  %v204_v38 = vld [vmem:[#allocation8] sm:$0xff] }
  0x27   :  { %188 = vmatpush.msra.mxu1 %v173_v8  ;;  %v205_v37 = vld [vmem:[#allocation8 + $0x8] sm:$0xff]  ;;  %v260_v39 = vld [vmem:[#allocation10 + $0x78] sm:$0xff]  ;;  %v259_v40 = vld [vmem:[#allocation10 + $0x70] sm:$0xff] }
  0x28   :  { %227 = vmatpush.msra.mxu2 %v216_v22  ;;  %265 = vmatpush.msra.mxu3 %v260_v39  ;;  %v258_v41 = vld [vmem:[#allocation10 + $0x68] sm:$0xff]  ;;  %v257_v42 = vld [vmem:[#allocation10 + $0x60] sm:$0xff]  ;;  %v256_v43 = vld [vmem:[#allocation10 + $0x58] sm:$0xff]  ;;  %v327_v22 = vand.u32 127, %v326_v19 }
  0x29   :  { %189 = vmatpush.msra.mxu1 %v172_v9  ;;  %v255_v44 = vld [vmem:[#allocation10 + $0x50] sm:$0xff]  ;;  %v254_v45 = vld [vmem:[#allocation10 + $0x48] sm:$0xff]  ;;  %v253_v46 = vld [vmem:[#allocation10 + $0x40] sm:$0xff] }
  0x2a   :  { %228 = vmatpush.msra.mxu2 %v215_v23  ;;  %266 = vmatpush.msra.mxu3 %v259_v40  ;;  %v252_v47 = vld [vmem:[#allocation10 + $0x38] sm:$0xff]  ;;  %v251_v48 = vld [vmem:[#allocation10 + $0x30] sm:$0xff]  ;;  %v250_v49 = vld [vmem:[#allocation10 + $0x28] sm:$0xff]  ;;  %vm330_vm1 = vcmp.ge.s32.totalorder %v327_v22, 4 }
  0x2b   :  { %190 = vmatpush.msra.mxu1 %v171_v10  ;;  %v249_v50 = vld [vmem:[#allocation10 + $0x20] sm:$0xff]  ;;  %v248_v51 = vld [vmem:[#allocation10 + $0x18] sm:$0xff]  ;;  %v364_v52 = vld [vmem:[%s670_s4] ss:$0 sm:$0xff] }
  0x2c   :  { %229 = vmatpush.msra.mxu2 %v214_v24  ;;  %267 = vmatpush.msra.mxu3 %v258_v41  ;;  %v247_v56 = vld [vmem:[#allocation10 + $0x10] sm:$0xff]  ;;  %v246_v57 = vld [vmem:[#allocation10 + $0x8] sm:$0xff]  ;;  %v245_v58 = vld [vmem:[#allocation10] sm:$0xff] }
  0x2d   :  { %191 = vmatpush.msra.mxu1 %v170_v11  ;;  %v301_v59 = vld [vmem:[#allocation11 + $0x78] sm:$0xff]  ;;  %v300_v60 = vld [vmem:[#allocation11 + $0x70] sm:$0xff]  ;;  %v299_v61 = vld [vmem:[#allocation11 + $0x68] sm:$0xff] }
  0x2e   :  { %230 = vmatpush.msra.mxu2 %v213_v25  ;;  %268 = vmatpush.msra.mxu3 %v257_v42  ;;  %v298_v62 = vld [vmem:[#allocation11 + $0x60] sm:$0xff]  ;;  %v297_v63 = vld [vmem:[#allocation11 + $0x58] sm:$0xff]  ;;  %v296_v0 = vld [vmem:[#allocation11 + $0x50] sm:$0xff] }
  0x2f   :  { %192 = vmatpush.msra.mxu1 %v169_v12  ;;  %306 = vmatpush.msrb.mxu0 %v301_v59  ;;  %v295_v1 = vld [vmem:[#allocation11 + $0x48] sm:$0xff]  ;;  %v294_v2 = vld [vmem:[#allocation11 + $0x40] sm:$0xff]  ;;  %v293_v3 = vld [vmem:[#allocation11 + $0x38] sm:$0xff] }
  0x30   :  { %231 = vmatpush.msra.mxu2 %v212_v26  ;;  %269 = vmatpush.msra.mxu3 %v256_v43  ;;  %v292_v4 = vld [vmem:[#allocation11 + $0x30] sm:$0xff]  ;;  %v291_v5 = vld [vmem:[#allocation11 + $0x28] sm:$0xff]  ;;  %v290_v6 = vld [vmem:[#allocation11 + $0x20] sm:$0xff] }
  0x31   :  { %193 = vmatpush.msra.mxu1 %v168_v13  ;;  %307 = vmatpush.msrb.mxu0 %v300_v60  ;;  %v289_v7 = vld [vmem:[#allocation11 + $0x18] sm:$0xff]  ;;  %v365_v8 = vld [vmem:[%s672_s6] ss:$0 sm:$0xff]  ;;  %v288_v12 = vld [vmem:[#allocation11 + $0x10] sm:$0xff] }
  0x32   :  { %232 = vmatpush.msra.mxu2 %v211_v27  ;;  %270 = vmatpush.msra.mxu3 %v255_v44  ;;  %v287_v13 = vld [vmem:[#allocation11 + $0x8] sm:$0xff] }
  0x33   :  { %194 = vmatpush.msra.mxu1 %v167_v14  ;;  %308 = vmatpush.msrb.mxu0 %v299_v61  ;;  %v286_v14 = vld [vmem:[#allocation11] sm:$0xff]  ;;  %v367_v20 = vld [vmem:[%s676_s10] ss:$0 sm:$0xff] }
  0x34   :  { %233 = vmatpush.msra.mxu2 %v210_v28  ;;  %271 = vmatpush.msra.mxu3 %v254_v45 }
  0x35   :  { %195 = vmatpush.msra.mxu1 %v166_v15  ;;  %309 = vmatpush.msrb.mxu0 %v298_v62  ;;  %v366_v15 = vld [vmem:[%s674_s8] ss:$0 sm:$0xff] }
  0x36   :  { %234 = vmatpush.msra.mxu2 %v209_v29  ;;  %272 = vmatpush.msra.mxu3 %v253_v46 }
  0x37   :  { %196 = vmatpush.msra.mxu1 %v165_v16  ;;  %310 = vmatpush.msrb.mxu0 %v297_v63 }
  0x38   :  { %235 = vmatpush.msra.mxu2 %v208_v30  ;;  %273 = vmatpush.msra.mxu3 %v252_v47 }
  0x39   :  { %197 = vmatpush.msra.mxu1 %v164_v17  ;;  %311 = vmatpush.msrb.mxu0 %v296_v0 }
  0x3a   :  { %236 = vmatpush.msra.mxu2 %v207_v31  ;;  %274 = vmatpush.msra.mxu3 %v251_v48 }
  0x3b   :  { %198 = vmatpush.msra.mxu1 %v163_v18  ;;  %312 = vmatpush.msrb.mxu0 %v295_v1 }
  0x3c   :  { %237 = vmatpush.msra.mxu2 %v206_v36  ;;  %275 = vmatpush.msra.mxu3 %v250_v49 }
  0x3d   :  { %313 = vmatpush.msrb.mxu0 %v294_v2 }
  0x3e   :  { %238 = vmatpush.msra.mxu2 %v205_v37  ;;  %276 = vmatpush.msra.mxu3 %v249_v50 }
  0x3f   :  { %314 = vmatpush.msrb.mxu0 %v293_v3 }
  0x40   :  { %239 = vmatpush.msra.mxu2 %v204_v38  ;;  %277 = vmatpush.msra.mxu3 %v248_v51 }
  0x41   :  { %315 = vmatpush.msrb.mxu0 %v292_v4 }
  0x42   :  { %278 = vmatpush.msra.mxu3 %v247_v56 }
  0x43   :  { %316 = vmatpush.msrb.mxu0 %v291_v5 }
  0x44   :  { %279 = vmatpush.msra.mxu3 %v246_v57 }
  0x45   :  { %317 = vmatpush.msrb.mxu0 %v290_v6 }
  0x46   :  { %280 = vmatpush.msra.mxu3 %v245_v58 }
  0x47   :  { %318 = vmatpush.msrb.mxu0 %v289_v7 }
  0x49   :  { %319 = vmatpush.msrb.mxu0 %v288_v12 }
  0x4b   :  { %320 = vmatpush.msrb.mxu0 %v287_v13 }
  0x4d   :  { %321 = vmatpush.msrb.mxu0 %v286_v14 }
  0x9c   :  { %v159_v33 = vpop.f32.mrf.mxu0 }
  0x9d   :  { %v160_v34 = vadd.f32 %v363_v32, %v159_v33 }
  0x9f   :  { %v162_v35 = vmax.f32 %v160_v34, 0.0 }
  0xa1   :  { %199 = vmatmul.f32.vlgmr.msra.gmra.mxu1 %v162_v35 }
 0x11e   :  { %v200_v53 = vpop.f32.mrf.mxu1 }
 0x11f   :  { %v201_v54 = vadd.f32 %v364_v52, %v200_v53 }
 0x121   :  { %v203_v55 = vmax.f32 %v201_v54, 0.0 }
 0x123   :  { %240 = vmatmul.f32.vlgmr.msra.gmra.mxu2 %v203_v55 }
 0x1a6   :  { %v241_v9 = vpop.f32.mrf.mxu2 }
 0x1a7   :  { %v242_v10 = vadd.f32 %v365_v8, %v241_v9 }
 0x1a9   :  { %v244_v11 = vmax.f32 %v242_v10, 0.0 }
 0x1ab   :  { %281 = vmatmul.f32.vlgmr.msra.gmra.mxu3 %v244_v11 }
 0x22e   :  { %v282_v16 = vpop.f32.mrf.mxu3 }
 0x22f   :  { %v283_v17 = vadd.f32 %v366_v15, %v282_v16 }
 0x231   :  { %v285_v18 = vmax.f32 %v283_v17, 0.0 }
 0x233   :  { %322 = vmatmul.f32.vlgmr.msrb.gmra.mxu0 %v285_v18 }
 0x2b0   :  { %v323_v21 = vpop.f32.mrf.mxu0 }
 0x2b1   :  { %v324_v23 = vadd.f32 %v367_v20, %v323_v21 }
 0x2b3   :  { %v328_v24 = vmax.f32 %v324_v23, -20.0 }
 0x2b5   :  { %v329_v25 = vmin.f32 %v328_v24, 2.0 }
 0x2b7   :  { %v331_v26 = vsel %vm330_vm1, %v329_v25, %v324_v23 }
 0x2b8   :  { %332 = vst [vmem:[#allocation13] sm:$0xff] %v331_v26 }
 0x2b9   :  { %343 = dma.vmem_to_hbm [thread:$0]  %s339_s5, 128, %s341_s14, [#allocation4]  }
 0x2ba   :  { %544 = dma.done.wait [#allocation4], 128  }
 0x2bb   :  { %545 = vsyncadd [#allocation4], 4294967168 }
 0x2bc   :  { %348 = vsyncpa [#allocation3], 1 }
 0x2bd   :  { %349 = vsyncpa [#allocation6], 1 }
 0x2be   :  { %350 = vsyncpa [#allocation9], 1 }
 0x2bf   :  { %351 = vsyncpa [#allocation12], 1 }
 0x2c0   :  { %352 = vsyncpa [#allocation4], 1 }

// kernel: tpu_custom_call.1
= control target key start
LH: loop header
LB: loop body
LE: loop exit
PB: predicated region body
PF: predicated region fallthrough
CT: control target
= control target key end

     0   :  { %16 = vsyncpa [#allocation3], 0  ;;  %s666_s0 = inlined_call_operand.hbm [shape: f32[8,16], index: 0, kind: input, shape index: {}]   ;;  %s667_s1 = inlined_call_operand.hbm [shape: f32[16,128], index: 1, kind: input, shape index: {}]   ;;  %s668_s2 = inlined_call_operand.vmem [shape: f32[1,128], index: 2, kind: input, shape index: {}]   ;;  %s669_s3 = inlined_call_operand.hbm [shape: f32[128,128], index: 3, kind: input, shape index: {}]   ;;  %s670_s4 = inlined_call_operand.vmem [shape: f32[1,128], index: 4, kind: input, shape index: {}]   ;;  %s671_s5 = inlined_call_operand.hbm [shape: f32[128,128], index: 5, kind: input, shape index: {}]   ;;  %s672_s6 = inlined_call_operand.vmem [shape: f32[1,128], index: 6, kind: input, shape index: {}]   ;;  %s673_s7 = inlined_call_operand.hbm [shape: f32[128,128], index: 7, kind: input, shape index: {}]   ;;  %s674_s8 = inlined_call_operand.vmem [shape: f32[1,128], index: 8, kind: input, shape index: {}]   ;;  %s675_s9 = inlined_call_operand.hbm [shape: f32[128,128], index: 9, kind: input, shape index: {}]   ;;  %s676_s10 = inlined_call_operand.vmem [shape: f32[1,128], index: 10, kind: input, shape index: {}]   ;;  %s677_s11 = inlined_call_operand.hbm [shape: f32[8,128], index: 11, kind: output, shape index: {}]  }
   0x1   :  { %17 = vsyncpa [#allocation6], 0 }
   0x2   :  { %18 = vsyncpa [#allocation9], 0 }
   0x3   :  { %19 = vsyncpa [#allocation12], 0  ;;  %s36_s19 = sshll.u32 %s667_s1, 4  ;;  %s37_s19 = int_to_ptr.hbm [resolvable:$true] %s36_s19 }
   0x4   :  { %20 = vsyncpa [#allocation4], 0  ;;  %s546_s20 = smov [#allocation5]   ;;  %s66_s24 = sshll.u32 %s671_s5, 4  ;;  %s67_s24 = int_to_ptr.hbm [resolvable:$true] %s66_s24 }
   0x5   :  { %s38_s21 = sshll.u32 %s546_s20, 4  ;;  %s547_s25 = smov 128   ;;  %s39_s21 = int_to_ptr.vmem [resolvable:$true] %s38_s21 }
   0x6   :  { %s548_s26 = smov 8   ;;  %s549_s27 = smov [#allocation8]  }
   0x7   :  { %44 = dma.hbm_to_vmem [thread:$0]  %s37_s19, 256, %s39_s21, [#allocation6], %s547_s25, %s547_s25, %s548_s26  }
   0x8   :  { %s68_s28 = sshll.u32 %s549_s27, 4  ;;  %s26_s30 = sshll.u32 %s666_s0, 4  ;;  %s69_s28 = int_to_ptr.vmem [resolvable:$true] %s68_s28  ;;  %s27_s30 = int_to_ptr.hbm [resolvable:$true] %s26_s30 }
   0x9   :  { %74 = dma.hbm_to_vmem [thread:$0]  %s67_s24, 2048, %s69_s28, [#allocation9], %s547_s25, %s547_s25, %s548_s26  }
   0xa   :  { %s51_s13 = sshll.u32 %s669_s3, 4  ;;  %s550_s14 = smov [#allocation2]   ;;  %s52_s13 = int_to_ptr.hbm [resolvable:$true] %s51_s13 }
   0xb   :  { %s28_s15 = sshll.u32 %s550_s14, 4  ;;  %s551_s16 = smov [#allocation7]   ;;  %s29_s15 = int_to_ptr.vmem [resolvable:$true] %s28_s15 }
   0xc   :  { %31 = dma.hbm_to_vmem [thread:$0]  %s27_s30, 128, %s29_s15, [#allocation3]  }
   0xd   :  { %s53_s17 = sshll.u32 %s551_s16, 4  ;;  %s81_s0 = sshll.u32 %s673_s7, 4  ;;  %s54_s17 = int_to_ptr.vmem [resolvable:$true] %s53_s17  ;;  %s82_s0 = int_to_ptr.hbm [resolvable:$true] %s81_s0 }
   0xe   :  { %59 = dma.hbm_to_vmem [thread:$0]  %s52_s13, 2048, %s54_s17, [#allocation6], %s547_s25, %s547_s25, %s548_s26  }
   0xf   :  { %s96_s3 = sshll.u32 %s675_s9, 4  ;;  %s552_s22 = smov [#allocation10]   ;;  %s97_s3 = int_to_ptr.hbm [resolvable:$true] %s96_s3 }
  0x10   :  { %s83_s23 = sshll.u32 %s552_s22, 4  ;;  %s553_s24 = smov [#allocation11]   ;;  %s84_s23 = int_to_ptr.vmem [resolvable:$true] %s83_s23 }
  0x11   :  { %89 = dma.hbm_to_vmem [thread:$0]  %s82_s0, 2048, %s84_s23, [#allocation9], %s547_s25, %s547_s25, %s548_s26  }
  0x12   :  { %s98_s7 = sshll.u32 %s553_s24, 4  ;;  %s99_s7 = int_to_ptr.vmem [resolvable:$true] %s98_s7 }
  0x13   :  { %104 = dma.hbm_to_vmem [thread:$0]  %s97_s3, 2048, %s99_s7, [#allocation12], %s547_s25, %s547_s25, %s548_s26  }
  0x14   :  { %536 = dma.done.wait [#allocation3], 128  }
  0x15   :  { %537 = vsyncadd [#allocation3], 4294967168 }
  0x16   :  { %538 = dma.done.wait [#allocation6], 2304  }
  0x17   :  { %539 = vsyncadd [#allocation6], 4294964992 }
  0x18   :  { %540 = dma.done.wait [#allocation9], 4096  }
  0x19   :  { %541 = vsyncadd [#allocation9], 4294963200 }
  0x1a   :  { %542 = dma.done.wait [#allocation12], 2048  }
  0x1b   :  { %543 = vsyncadd [#allocation12], 4294965248  ;;  %v133_v0 = vld [vmem:[#allocation5 + $0x8] sm:$0xff]  ;;  %v132_v1 = vld [vmem:[#allocation5] sm:$0xff]  ;;  %vm138_vm0 = vcmask 130048   ;;  %s554_s30 = smov [#allocation13]  }
  0x1c   :  { %156 = vmatpush.msra.mxu0 %v133_v0  ;;  %v131_v2 = vld [vmem:[#allocation2] sm:$0xff]  ;;  %v178_v3 = vld [vmem:[#allocation7 + $0x78] sm:$0xff]  ;;  %v177_v4 = vld [vmem:[#allocation7 + $0x70] sm:$0xff]  ;;  %s338_s5 = sshll.u32 %s554_s30, 4  ;;  %s340_s14 = sshll.u32 %s677_s11, 4  ;;  %s339_s5 = int_to_ptr.vmem [resolvable:$true] %s338_s5  ;;  %s341_s14 = int_to_ptr.hbm [resolvable:$true] %s340_s14 }
  0x1d   :  { %183 = vmatpush.msra.mxu1 %v178_v3  ;;  %v176_v5 = vld [vmem:[#allocation7 + $0x68] sm:$0xff]  ;;  %v175_v6 = vld [vmem:[#allocation7 + $0x60] sm:$0xff]  ;;  %v174_v7 = vld [vmem:[#allocation7 + $0x58] sm:$0xff] }
  0x1e   :  { %157 = vmatpush.msra.mxu0 %v132_v1  ;;  %v173_v8 = vld [vmem:[#allocation7 + $0x50] sm:$0xff]  ;;  %v172_v9 = vld [vmem:[#allocation7 + $0x48] sm:$0xff]  ;;  %v171_v10 = vld [vmem:[#allocation7 + $0x40] sm:$0xff] }
  0x1f   :  { %353 = vmatmul.msk.f32.vlgmr.msra.gmra.mxu0 %vm138_vm0, %v131_v2  ;;  %184 = vmatpush.msra.mxu1 %v177_v4  ;;  %v170_v11 = vld [vmem:[#allocation7 + $0x38] sm:$0xff]  ;;  %v169_v12 = vld [vmem:[#allocation7 + $0x30] sm:$0xff]  ;;  %v168_v13 = vld [vmem:[#allocation7 + $0x28] sm:$0xff] }
  0x20   :  { %v167_v14 = vld [vmem:[#allocation7 + $0x20] sm:$0xff]  ;;  %v166_v15 = vld [vmem:[#allocation7 + $0x18] sm:$0xff]  ;;  %v165_v16 = vld [vmem:[#allocation7 + $0x10] sm:$0xff] }
  0x21   :  { %185 = vmatpush.msra.mxu1 %v176_v5  ;;  %v164_v17 = vld [vmem:[#allocation7 + $0x8] sm:$0xff]  ;;  %v163_v18 = vld [vmem:[#allocation7] sm:$0xff]  ;;  %v219_v19 = vld [vmem:[#allocation8 + $0x78] sm:$0xff] }
  0x22   :  { %v218_v20 = vld [vmem:[#allocation8 + $0x70] sm:$0xff]  ;;  %224 = vmatpush.msra.mxu2 %v219_v19  ;;  %v217_v21 = vld [vmem:[#allocation8 + $0x68] sm:$0xff]  ;;  %v216_v22 = vld [vmem:[#allocation8 + $0x60] sm:$0xff]  ;;  %v326_v19 = vlaneseq }
  0x23   :  { %186 = vmatpush.msra.mxu1 %v175_v6  ;;  %v215_v23 = vld [vmem:[#allocation8 + $0x58] sm:$0xff]  ;;  %v214_v24 = vld [vmem:[#allocation8 + $0x50] sm:$0xff]  ;;  %v213_v25 = vld [vmem:[#allocation8 + $0x48] sm:$0xff] }
  0x24   :  { %225 = vmatpush.msra.mxu2 %v218_v20  ;;  %v212_v26 = vld [vmem:[#allocation8 + $0x40] sm:$0xff]  ;;  %v211_v27 = vld [vmem:[#allocation8 + $0x38] sm:$0xff]  ;;  %v210_v28 = vld [vmem:[#allocation8 + $0x30] sm:$0xff] }
  0x25   :  { %187 = vmatpush.msra.mxu1 %v174_v7  ;;  %v209_v29 = vld [vmem:[#allocation8 + $0x28] sm:$0xff]  ;;  %v208_v30 = vld [vmem:[#allocation8 + $0x20] sm:$0xff]  ;;  %v207_v31 = vld [vmem:[#allocation8 + $0x18] sm:$0xff] }
  0x26   :  { %226 = vmatpush.msra.mxu2 %v217_v21  ;;  %v363_v32 = vld [vmem:[%s668_s2] ss:$0 sm:$0xff]  ;;  %v206_v36 = vld [vmem:[#allocation8 + $0x10] sm:$0xff]  ;;  %v204_v38 = vld [vmem:[#allocation8] sm:$0xff] }
  0x27   :  { %188 = vmatpush.msra.mxu1 %v173_v8  ;;  %v205_v37 = vld [vmem:[#allocation8 + $0x8] sm:$0xff]  ;;  %v260_v39 = vld [vmem:[#allocation10 + $0x78] sm:$0xff]  ;;  %v259_v40 = vld [vmem:[#allocation10 + $0x70] sm:$0xff] }
  0x28   :  { %227 = vmatpush.msra.mxu2 %v216_v22  ;;  %265 = vmatpush.msra.mxu3 %v260_v39  ;;  %v258_v41 = vld [vmem:[#allocation10 + $0x68] sm:$0xff]  ;;  %v257_v42 = vld [vmem:[#allocation10 + $0x60] sm:$0xff]  ;;  %v256_v43 = vld [vmem:[#allocation10 + $0x58] sm:$0xff]  ;;  %v327_v22 = vand.u32 127, %v326_v19 }
  0x29   :  { %189 = vmatpush.msra.mxu1 %v172_v9  ;;  %v255_v44 = vld [vmem:[#allocation10 + $0x50] sm:$0xff]  ;;  %v254_v45 = vld [vmem:[#allocation10 + $0x48] sm:$0xff]  ;;  %v253_v46 = vld [vmem:[#allocation10 + $0x40] sm:$0xff] }
  0x2a   :  { %228 = vmatpush.msra.mxu2 %v215_v23  ;;  %266 = vmatpush.msra.mxu3 %v259_v40  ;;  %v252_v47 = vld [vmem:[#allocation10 + $0x38] sm:$0xff]  ;;  %v251_v48 = vld [vmem:[#allocation10 + $0x30] sm:$0xff]  ;;  %v250_v49 = vld [vmem:[#allocation10 + $0x28] sm:$0xff]  ;;  %vm330_vm1 = vcmp.ge.s32.totalorder %v327_v22, 4 }
  0x2b   :  { %190 = vmatpush.msra.mxu1 %v171_v10  ;;  %v249_v50 = vld [vmem:[#allocation10 + $0x20] sm:$0xff]  ;;  %v248_v51 = vld [vmem:[#allocation10 + $0x18] sm:$0xff]  ;;  %v364_v52 = vld [vmem:[%s670_s4] ss:$0 sm:$0xff] }
  0x2c   :  { %229 = vmatpush.msra.mxu2 %v214_v24  ;;  %267 = vmatpush.msra.mxu3 %v258_v41  ;;  %v247_v56 = vld [vmem:[#allocation10 + $0x10] sm:$0xff]  ;;  %v246_v57 = vld [vmem:[#allocation10 + $0x8] sm:$0xff]  ;;  %v245_v58 = vld [vmem:[#allocation10] sm:$0xff] }
  0x2d   :  { %191 = vmatpush.msra.mxu1 %v170_v11  ;;  %v301_v59 = vld [vmem:[#allocation11 + $0x78] sm:$0xff]  ;;  %v300_v60 = vld [vmem:[#allocation11 + $0x70] sm:$0xff]  ;;  %v299_v61 = vld [vmem:[#allocation11 + $0x68] sm:$0xff] }
  0x2e   :  { %230 = vmatpush.msra.mxu2 %v213_v25  ;;  %268 = vmatpush.msra.mxu3 %v257_v42  ;;  %v298_v62 = vld [vmem:[#allocation11 + $0x60] sm:$0xff]  ;;  %v297_v63 = vld [vmem:[#allocation11 + $0x58] sm:$0xff]  ;;  %v296_v0 = vld [vmem:[#allocation11 + $0x50] sm:$0xff] }
  0x2f   :  { %192 = vmatpush.msra.mxu1 %v169_v12  ;;  %306 = vmatpush.msrb.mxu0 %v301_v59  ;;  %v295_v1 = vld [vmem:[#allocation11 + $0x48] sm:$0xff]  ;;  %v294_v2 = vld [vmem:[#allocation11 + $0x40] sm:$0xff]  ;;  %v293_v3 = vld [vmem:[#allocation11 + $0x38] sm:$0xff] }
  0x30   :  { %231 = vmatpush.msra.mxu2 %v212_v26  ;;  %269 = vmatpush.msra.mxu3 %v256_v43  ;;  %v292_v4 = vld [vmem:[#allocation11 + $0x30] sm:$0xff]  ;;  %v291_v5 = vld [vmem:[#allocation11 + $0x28] sm:$0xff]  ;;  %v290_v6 = vld [vmem:[#allocation11 + $0x20] sm:$0xff] }
  0x31   :  { %193 = vmatpush.msra.mxu1 %v168_v13  ;;  %307 = vmatpush.msrb.mxu0 %v300_v60  ;;  %v289_v7 = vld [vmem:[#allocation11 + $0x18] sm:$0xff]  ;;  %v365_v8 = vld [vmem:[%s672_s6] ss:$0 sm:$0xff]  ;;  %v288_v12 = vld [vmem:[#allocation11 + $0x10] sm:$0xff] }
  0x32   :  { %232 = vmatpush.msra.mxu2 %v211_v27  ;;  %270 = vmatpush.msra.mxu3 %v255_v44  ;;  %v287_v13 = vld [vmem:[#allocation11 + $0x8] sm:$0xff] }
  0x33   :  { %194 = vmatpush.msra.mxu1 %v167_v14  ;;  %308 = vmatpush.msrb.mxu0 %v299_v61  ;;  %v286_v14 = vld [vmem:[#allocation11] sm:$0xff]  ;;  %v367_v20 = vld [vmem:[%s676_s10] ss:$0 sm:$0xff] }
  0x34   :  { %233 = vmatpush.msra.mxu2 %v210_v28  ;;  %271 = vmatpush.msra.mxu3 %v254_v45 }
  0x35   :  { %195 = vmatpush.msra.mxu1 %v166_v15  ;;  %309 = vmatpush.msrb.mxu0 %v298_v62  ;;  %v366_v15 = vld [vmem:[%s674_s8] ss:$0 sm:$0xff] }
  0x36   :  { %234 = vmatpush.msra.mxu2 %v209_v29  ;;  %272 = vmatpush.msra.mxu3 %v253_v46 }
  0x37   :  { %196 = vmatpush.msra.mxu1 %v165_v16  ;;  %310 = vmatpush.msrb.mxu0 %v297_v63 }
  0x38   :  { %235 = vmatpush.msra.mxu2 %v208_v30  ;;  %273 = vmatpush.msra.mxu3 %v252_v47 }
  0x39   :  { %197 = vmatpush.msra.mxu1 %v164_v17  ;;  %311 = vmatpush.msrb.mxu0 %v296_v0 }
  0x3a   :  { %236 = vmatpush.msra.mxu2 %v207_v31  ;;  %274 = vmatpush.msra.mxu3 %v251_v48 }
  0x3b   :  { %198 = vmatpush.msra.mxu1 %v163_v18  ;;  %312 = vmatpush.msrb.mxu0 %v295_v1 }
  0x3c   :  { %237 = vmatpush.msra.mxu2 %v206_v36  ;;  %275 = vmatpush.msra.mxu3 %v250_v49 }
  0x3d   :  { %313 = vmatpush.msrb.mxu0 %v294_v2 }
  0x3e   :  { %238 = vmatpush.msra.mxu2 %v205_v37  ;;  %276 = vmatpush.msra.mxu3 %v249_v50 }
  0x3f   :  { %314 = vmatpush.msrb.mxu0 %v293_v3 }
  0x40   :  { %239 = vmatpush.msra.mxu2 %v204_v38  ;;  %277 = vmatpush.msra.mxu3 %v248_v51 }
  0x41   :  { %315 = vmatpush.msrb.mxu0 %v292_v4 }
  0x42   :  { %278 = vmatpush.msra.mxu3 %v247_v56 }
  0x43   :  { %316 = vmatpush.msrb.mxu0 %v291_v5 }
  0x44   :  { %279 = vmatpush.msra.mxu3 %v246_v57 }
  0x45   :  { %317 = vmatpush.msrb.mxu0 %v290_v6 }
  0x46   :  { %280 = vmatpush.msra.mxu3 %v245_v58 }
  0x47   :  { %318 = vmatpush.msrb.mxu0 %v289_v7 }
  0x49   :  { %319 = vmatpush.msrb.mxu0 %v288_v12 }
  0x4b   :  { %320 = vmatpush.msrb.mxu0 %v287_v13 }
  0x4d   :  { %321 = vmatpush.msrb.mxu0 %v286_v14 }
  0x9c   :  { %v159_v33 = vpop.f32.mrf.mxu0 }
  0x9d   :  { %v160_v34 = vadd.f32 %v363_v32, %v159_v33 }
  0x9f   :  { %v162_v35 = vmax.f32 %v160_v34, 0.0 }
  0xa1   :  { %199 = vmatmul.f32.vlgmr.msra.gmra.mxu1 %v162_v35 }
 0x11e   :  { %v200_v53 = vpop.f32.mrf.mxu1 }
 0x11f   :  { %v201_v54 = vadd.f32 %v364_v52, %v200_v53 }
 0x121   :  { %v203_v55 = vmax.f32 %v201_v54, 0.0 }
 0x123   :  { %240 = vmatmul.f32.vlgmr.msra.gmra.mxu2 %v203_v55 }
 0x1a6   :  { %v241_v9 = vpop.f32.mrf.mxu2 }
 0x1a7   :  { %v242_v10 = vadd.f32 %v365_v8, %v241_v9 }
 0x1a9   :  { %v244_v11 = vmax.f32 %v242_v10, 0.0 }
 0x1ab   :  { %281 = vmatmul.f32.vlgmr.msra.gmra.mxu3 %v244_v11 }
 0x22e   :  { %v282_v16 = vpop.f32.mrf.mxu3 }
 0x22f   :  { %v283_v17 = vadd.f32 %v366_v15, %v282_v16 }
 0x231   :  { %v285_v18 = vmax.f32 %v283_v17, 0.0 }
 0x233   :  { %322 = vmatmul.f32.vlgmr.msrb.gmra.mxu0 %v285_v18 }
 0x2b0   :  { %v323_v21 = vpop.f32.mrf.mxu0 }
 0x2b1   :  { %v324_v23 = vadd.f32 %v367_v20, %v323_v21 }
 0x2b3   :  { %v328_v24 = vmax.f32 %v324_v23, -20.0 }
 0x2b5   :  { %v329_v25 = vmin.f32 %v328_v24, 2.0 }
 0x2b7   :  { %v331_v26 = vsel %vm330_vm1, %v329_v25, %v324_v23 }
 0x2b8   :  { %332 = vst [vmem:[#allocation13] sm:$0xff] %v331_v26 }
 0x2b9   :  { %343 = dma.vmem_to_hbm [thread:$0]  %s339_s5, 128, %s341_s14, [#allocation4]  }
 0x2ba   :  { %544 = dma.done.wait [#allocation4], 128  }
 0x2bb   :  { %545 = vsyncadd [#allocation4], 4294967168 }
 0x2bc   :  { %348 = vsyncpa [#allocation3], 1 }
 0x2bd   :  { %349 = vsyncpa [#allocation6], 1 }
 0x2be   :  { %350 = vsyncpa [#allocation9], 1 }
 0x2bf   :  { %351 = vsyncpa [#allocation12], 1 }
 0x2c0   :  { %352 = vsyncpa [#allocation4], 1 }

</bundles_post_ra>
